<compile_context>
chip_gen: v5e
topology: v5e:2x2
jax: 0.10.0
libtpu: 0.0.40
codegen_flags: <defaults>
</compile_context>

<pallas_src>
import functools

import jax
import jax.numpy as jnp
from jax.experimental import pallas as pl
from jax.experimental.pallas import tpu as pltpu


def _round_up(v, m):
    return (v + m - 1) // m * m


def _pick_tile(n_pad, preferred):
    for t in preferred:
        if t <= n_pad and n_pad % t == 0:
            return t
    return 128


def _vmem_limit_bytes():
    """Generation-aware scoped-VMEM limit (~3/4 of physical capacity).

    v5e/v6e (128 MiB) -> 96 MiB; v7x (64 MiB per TC) -> 48 MiB.  Falls back to
    48 MiB (safe on every generation) if the hardware query is unavailable."""
    cap = None
    try:
        cap = getattr(pltpu.get_tpu_info(), "vmem_capacity_bytes", None)
    except Exception:
        cap = None
    if not cap:
        cap = 64 * 1024 * 1024
    return min(int(cap) * 3 // 4, 112 * 1024 * 1024)


# ----------------------------- kernels ---------------------------------------


def _support1_kernel(x_ref, w1_ref, s1_ref):
    # support1 = x @ W_hidden (bf16 MXU operands, f32 accumulation).
    s1_ref[...] = jnp.dot(x_ref[...], w1_ref[...],
                          preferred_element_type=jnp.float32).astype(jnp.bfloat16)


def _gcn_layer1_kernel(adj_ref, s1_ref, wcat_ref, sc_ref):
    # One adj row-panel of: support_cat = relu(adj @ support1) @ [W_mean|W_logstd].
    adj_blk = adj_ref[...].astype(jnp.bfloat16)          # per-panel cast (f32 adj stream)
    hidden = jnp.maximum(
        jnp.dot(adj_blk, s1_ref[...], preferred_element_type=jnp.float32), 0.0)
    sc_ref[...] = jnp.dot(hidden.astype(jnp.bfloat16), wcat_ref[...],
                          preferred_element_type=jnp.float32).astype(jnp.bfloat16)


def _gcn_layer2_kernel(adj_ref, sc_ref, zcat_ref):
    # One adj row-panel of: zcat = adj @ support_cat -> [z_mean | z_log_std | 0].
    zcat_ref[...] = jnp.dot(adj_ref[...].astype(jnp.bfloat16), sc_ref[...],
                            preferred_element_type=jnp.float32)


def _inner_product_decoder_kernel(zi_ref, zall_ref, recon_ref, *, z_dim, tm):
    # recon tile = z_i @ z_j^T via NT contraction (no transpose). zcat packs
    # [z_mean | z_log_std | pad]; zeroing the non-mean lanes of the i-operand
    # alone removes them from the contraction (trivial VPU filler).
    j = pl.program_id(1)
    col = jax.lax.broadcasted_iota(jnp.int32, zi_ref.shape, 1)
    zi = jnp.where(col < z_dim, zi_ref[...], 0.0)
    zj = zall_ref[pl.ds(pl.multiple_of(j * tm, tm), tm), :]
    recon_ref[...] = jax.lax.dot_general(
        zi, zj, dimension_numbers=(((1,), (1,)), ((), ())),
        preferred_element_type=jnp.float32)


# ----------------------------- wrapper ----------------------------------------


def gcn_model_vae_forward(x, adj, w_hidden, w_mean, w_logstd):
    n, f_in = x.shape
    hidden_dim = w_hidden.shape[1]
    z_dim = w_mean.shape[1]

    n_pad = _round_up(n, 128)
    f_pad = _round_up(f_in, 128)
    # Pad H / 2*Z to 256-multiples once they exceed 128 so the adj contractions
    # feed the full 256-wide MXU on v6e/v7x (no effect on v5e's 128-wide MXU).
    h_pad = 128 if hidden_dim <= 128 else _round_up(hidden_dim, 256)
    zc_pad = 128 if 2 * z_dim <= 128 else _round_up(2 * z_dim, 256)

    bf16 = jnp.bfloat16
    f32 = jnp.float32

    # Small operands: pad + cast to bf16 in the wrapper (negligible traffic).
    x_p = jnp.zeros((n_pad, f_pad), bf16).at[:n, :f_in].set(x.astype(bf16))
    w1_p = (jnp.zeros((f_pad, h_pad), bf16)
            .at[:f_in, :hidden_dim].set(w_hidden.astype(bf16)))
    wcat_p = (jnp.zeros((h_pad, zc_pad), bf16)
              .at[:hidden_dim, :z_dim].set(w_mean.astype(bf16))
              .at[:hidden_dim, z_dim:2 * z_dim].set(w_logstd.astype(bf16)))

    # adj: kept f32, cast to bf16 per row-panel inside the kernels.  Padding is
    # only materialized when N is not already a multiple of 128.
    if n == n_pad and adj.dtype == f32:
        adj_p = adj
    else:
        adj_p = jnp.zeros((n_pad, n_pad), f32).at[:n, :n].set(adj.astype(f32))

    vmem_limit = _vmem_limit_bytes()
    vmem = pl.BlockSpec(memory_space=pltpu.MemorySpace.VMEM)

    tm_e = _pick_tile(n_pad, (256, 128))        # encoder adj row-panel tile
    tm_d = _pick_tile(n_pad, (512, 256, 128))   # decoder output tile

    # --- support1 = x @ W_hidden (small, un-gridded) --------------------------
    # TODO(synk): grid over row blocks of x when N_pad * F_pad no longer fits VMEM.
    support1 = pl.pallas_call(
        _support1_kernel,
        out_shape=jax.ShapeDtypeStruct((n_pad, h_pad), bf16),
        in_specs=[vmem, vmem],
        out_specs=vmem,
        compiler_params=pltpu.CompilerParams(vmem_limit_bytes=vmem_limit),
    )(x_p, w1_p)

    # --- Pass 1: support_cat = relu(adj @ support1) @ wcat, gridded over rows --
    # adj streamed as (tm_e, N_pad) f32 panels (pipelined DMA); support1 and
    # wcat stay VMEM-resident across the whole grid (constant index_map).
    support_cat = pl.pallas_call(
        _gcn_layer1_kernel,
        out_shape=jax.ShapeDtypeStruct((n_pad, zc_pad), bf16),
        grid=(n_pad // tm_e,),
        in_specs=[pl.BlockSpec((tm_e, n_pad), lambda i: (i, 0)),
                  pl.BlockSpec((n_pad, h_pad), lambda i: (0, 0)),
                  pl.BlockSpec((h_pad, zc_pad), lambda i: (0, 0))],
        out_specs=pl.BlockSpec((tm_e, zc_pad), lambda i: (i, 0)),
        compiler_params=pltpu.CompilerParams(
            dimension_semantics=("parallel",),
            vmem_limit_bytes=vmem_limit),
    )(adj_p, support1, wcat_p)

    # --- Pass 2: zcat = adj @ support_cat, gridded over rows ------------------
    zcat = pl.pallas_call(
        _gcn_layer2_kernel,
        out_shape=jax.ShapeDtypeStruct((n_pad, zc_pad), f32),
        grid=(n_pad // tm_e,),
        in_specs=[pl.BlockSpec((tm_e, n_pad), lambda i: (i, 0)),
                  pl.BlockSpec((n_pad, zc_pad), lambda i: (0, 0))],
        out_specs=pl.BlockSpec((tm_e, zc_pad), lambda i: (i, 0)),
        compiler_params=pltpu.CompilerParams(
            dimension_semantics=("parallel",),
            vmem_limit_bytes=vmem_limit),
    )(adj_p, support_cat)

    # --- Decoder: recon = z @ z.T, tiled (tm_d, tm_d) over the N x N output ---
    # j-operand (whole packed z, N_pad x zc_pad f32) is resident in VMEM; only
    # the i-operand tile and the output tile are streamed per grid step.
    recon_p = pl.pallas_call(
        functools.partial(_inner_product_decoder_kernel, z_dim=z_dim, tm=tm_d),
        out_shape=jax.ShapeDtypeStruct((n_pad, n_pad), f32),
        grid=(n_pad // tm_d, n_pad // tm_d),
        in_specs=[pl.BlockSpec((tm_d, zc_pad), lambda i, j: (i, 0)),
                  pl.BlockSpec((n_pad, zc_pad), lambda i, j: (0, 0))],
        out_specs=pl.BlockSpec((tm_d, tm_d), lambda i, j: (i, j)),
        compiler_params=pltpu.CompilerParams(
            dimension_semantics=("parallel", "parallel"),
            vmem_limit_bytes=vmem_limit),
    )(zcat, zcat)

    recon = recon_p[:n, :n]
    z_mean = zcat[:n, :z_dim]
    z_log_std = zcat[:n, z_dim:2 * z_dim]
    return recon, z_mean, z_log_std


def _reference(x, adj, w1, w2, w3):
    hidden = jnp.maximum(adj @ (x @ w1), 0.0)
    z_mean = adj @ (hidden @ w2)
    z_log_std = adj @ (hidden @ w3)
    z = z_mean
    return z @ z.T, z_mean, z_log_std


if __name__ == "__main__":
    # Small synthetic problem consistent with the module's shapes.
    N, INPUT_DIM, HIDDEN_DIM, Z_DIM = 16, 32, 32, 16

    key = jax.random.PRNGKey(0)
    kx, ka, k1, k2, k3 = jax.random.split(key, 5)

    x = jax.random.normal(kx, (N, INPUT_DIM), dtype=jnp.float32)

    # Deterministic symmetric row-normalized adjacency (dense stand-in for spmm).
    a_raw = (jax.random.uniform(ka, (N, N)) > 0.7).astype(jnp.float32)
    a_sym = jnp.maximum(a_raw, a_raw.T) + jnp.eye(N, dtype=jnp.float32)
    deg_inv_sqrt = 1.0 / jnp.sqrt(a_sym.sum(axis=1))
    adj = deg_inv_sqrt[:, None] * a_sym * deg_inv_sqrt[None, :]

    # Glorot-style deterministic weight init (matches GraphConvolution shapes).
    def glorot(k, fan_in, fan_out):
        limit = jnp.sqrt(6.0 / (fan_in + fan_out))
        return jax.random.uniform(k, (fan_in, fan_out), jnp.float32, -limit, limit)

    w_hidden = glorot(k1, INPUT_DIM, HIDDEN_DIM)
    w_mean = glorot(k2, HIDDEN_DIM, Z_DIM)
    w_logstd = glorot(k3, HIDDEN_DIM, Z_DIM)

    recon, z_mean, z_log_std = jax.block_until_ready(
        gcn_model_vae_forward(x, adj, w_hidden, w_mean, w_logstd))

    ref_recon, ref_mean, ref_log = _reference(x, adj, w_hidden, w_mean, w_logstd)
    # bf16 MXU operands with f32 accumulation in the encoder: ~1e-2 agreement.
    assert jnp.allclose(recon, ref_recon, atol=5e-2, rtol=5e-2)
    assert jnp.allclose(z_mean, ref_mean, atol=5e-2, rtol=5e-2)
    assert jnp.allclose(z_log_std, ref_log, atol=5e-2, rtol=5e-2)

    print("KERNEL_OK")
</pallas_src>

<mosaic_0001>
module attributes {stable_mosaic.version = 11 : i64} {
  func.func @_support1_kernel(%arg0: memref<128x128xbf16, #tpu.memory_space<vmem>>, %arg1: memref<128x128xbf16, #tpu.memory_space<vmem>>, %arg2: memref<128x128xbf16, #tpu.memory_space<vmem>>) attributes {dimension_semantics = [], scalar_prefetch = 0 : i64, scratch_operands = 0 : i64, tpu.core_type = #tpu.core_type<tc>} {
    %c0 = arith.constant 0 : index
    %c0_0 = arith.constant 0 : index
    %0 = vector.load %arg0[%c0, %c0_0] : memref<128x128xbf16, #tpu.memory_space<vmem>>, vector<128x128xbf16>
    %c0_1 = arith.constant 0 : index
    %c0_2 = arith.constant 0 : index
    %1 = vector.load %arg1[%c0_1, %c0_2] : memref<128x128xbf16, #tpu.memory_space<vmem>>, vector<128x128xbf16>
    %cst = arith.constant dense<0.000000e+00> : vector<128x128xf32>
    %2 = tpu.matmul %0, %1, %cst {dimension_numbers = #tpu.dot_dimension_numbers<[1], [0], [0], [1], [0, 0, 1, 1], [], []>} : vector<128x128xbf16>, vector<128x128xbf16>, vector<128x128xf32> -> vector<128x128xf32>
    %3 = arith.truncf %2 : vector<128x128xf32> to vector<128x128xbf16>
    %c0_3 = arith.constant 0 : index
    %c0_4 = arith.constant 0 : index
    %4 = vector.load %arg2[%c0_3, %c0_4] : memref<128x128xbf16, #tpu.memory_space<vmem>>, vector<128x128xbf16>
    tpu.vector_store %arg2[%c0_3, %c0_4], %3 {strides = array<i32>} : memref<128x128xbf16, #tpu.memory_space<vmem>>, vector<128x128xbf16>,
    return
  }
}

</mosaic_0001>

<bundles_post_ra>
// kernel: tpu_custom_call.1
= control target key start
LH: loop header
LB: loop body
LE: loop exit
PB: predicated region body
PF: predicated region fallthrough
CT: control target
= control target key end

     0   :  { %7 = vsyncpa [#allocation3], 0  ;;  %s545_s0 = inlined_call_operand.hbm [shape: bf16[128,128], index: 0, kind: input, shape index: {}]   ;;  %s546_s1 = inlined_call_operand.hbm [shape: bf16[128,128], index: 1, kind: input, shape index: {}]   ;;  %s547_s2 = inlined_call_operand.hbm [shape: bf16[128,128], index: 2, kind: output, shape index: {}]  }
   0x1   :  { %8 = vsyncpa [#allocation6], 0 }
   0x2   :  { %9 = vsyncpa [#allocation4], 0  ;;  %s14_s11 = sshll.u32 %s545_s0, 4  ;;  %s507_s12 = smov [#allocation2]   ;;  %s15_s11 = int_to_ptr.hbm [resolvable:$true] %s14_s11 }
   0x3   :  { %s16_s13 = sshll.u32 %s507_s12, 4  ;;  %s27_s16 = sshll.u32 %s546_s1, 4  ;;  %s17_s13 = int_to_ptr.vmem [resolvable:$true] %s16_s13  ;;  %s28_s16 = int_to_ptr.hbm [resolvable:$true] %s27_s16 }
   0x4   :  { %s508_s17 = smov 64   ;;  %s509_s18 = smov 4  }
   0x5   :  { %22 = dma.hbm_to_vmem [thread:$0]  %s15_s11, 1024, %s17_s13, [#allocation3], %s508_s17, %s508_s17, %s509_s18  }
   0x6   :  { %s510_s19 = smov [#allocation5]  }
   0x7   :  { %s29_s20 = sshll.u32 %s510_s19, 4  ;;  %s30_s20 = int_to_ptr.vmem [resolvable:$true] %s29_s20 }
   0x8   :  { %35 = dma.hbm_to_vmem [thread:$0]  %s28_s16, 1024, %s30_s20, [#allocation6], %s508_s17, %s508_s17, %s509_s18  }
   0x9   :  { %501 = dma.done.wait [#allocation3], 1024  }
   0xa   :  { %502 = vsyncadd [#allocation3], 4294966272 }
   0xb   :  { %503 = dma.done.wait [#allocation6], 1024  }
   0xc   :  { %504 = vsyncadd [#allocation6], 4294966272  ;;  %v352_v0 = vld [vmem:[#allocation5 + $0x38] sm:$0xff]  ;;  %v351_v1 = vld [vmem:[#allocation5 + $0x30] sm:$0xff]  ;;  %s511_s0 = smov [#allocation7]   ;;  %s259_s23 = sshll.u32 %s547_s2, 4  ;;  %s260_s23 = int_to_ptr.hbm [resolvable:$true] %s259_s23 }
   0xd   :  { %172 = vmatpush.bf16.msra.mxu0 %v352_v0  ;;  %400 = vmatpush.bf16.msra.mxu1 %v352_v0  ;;  %v350_v2 = vld [vmem:[#allocation5 + $0x28] sm:$0xff]  ;;  %v349_v3 = vld [vmem:[#allocation5 + $0x20] sm:$0xff]  ;;  %v348_v4 = vld [vmem:[#allocation5 + $0x18] sm:$0xff]  ;;  %s257_s1 = sshll.u32 %s511_s0, 4  ;;  %s258_s1 = int_to_ptr.vmem [resolvable:$true] %s257_s1 }
   0xe   :  { %401 = vmatpush.bf16.msra.mxu2 %v352_v0  ;;  %402 = vmatpush.bf16.msra.mxu3 %v352_v0  ;;  %v347_v5 = vld [vmem:[#allocation5 + $0x10] sm:$0xff]  ;;  %v346_v6 = vld [vmem:[#allocation5 + $0x8] sm:$0xff]  ;;  %v345_v7 = vld [vmem:[#allocation5] sm:$0xff] }
   0xf   :  { %v337_v8 = vld [vmem:[#allocation2] sm:$0xff]  ;;  %v339_v9 = vld [vmem:[#allocation2 + $0x10] sm:$0xff]  ;;  %v338_v12 = vld [vmem:[#allocation2 + $0x8] sm:$0xff] }
  0x10   :  { %v341_v10 = vld [vmem:[#allocation2 + $0x20] sm:$0xff]  ;;  %v343_v11 = vld [vmem:[#allocation2 + $0x30] sm:$0xff]  ;;  %v340_v13 = vld [vmem:[#allocation2 + $0x18] sm:$0xff] }
  0x11   :  { %173 = vmatpush.bf16.msra.mxu0 %v351_v1  ;;  %403 = vmatpush.bf16.msra.mxu1 %v351_v1  ;;  %v342_v14 = vld [vmem:[#allocation2 + $0x28] sm:$0xff]  ;;  %v344_v15 = vld [vmem:[#allocation2 + $0x38] sm:$0xff] }
  0x12   :  { %404 = vmatpush.bf16.msra.mxu2 %v351_v1  ;;  %405 = vmatpush.bf16.msra.mxu3 %v351_v1 }
  0x15   :  { %174 = vmatpush.bf16.msra.mxu0 %v350_v2  ;;  %406 = vmatpush.bf16.msra.mxu1 %v350_v2 }
  0x16   :  { %407 = vmatpush.bf16.msra.mxu2 %v350_v2  ;;  %408 = vmatpush.bf16.msra.mxu3 %v350_v2 }
  0x19   :  { %175 = vmatpush.bf16.msra.mxu0 %v349_v3  ;;  %409 = vmatpush.bf16.msra.mxu1 %v349_v3 }
  0x1a   :  { %410 = vmatpush.bf16.msra.mxu2 %v349_v3  ;;  %411 = vmatpush.bf16.msra.mxu3 %v349_v3 }
  0x1d   :  { %176 = vmatpush.bf16.msra.mxu0 %v348_v4  ;;  %412 = vmatpush.bf16.msra.mxu1 %v348_v4 }
  0x1e   :  { %413 = vmatpush.bf16.msra.mxu2 %v348_v4  ;;  %414 = vmatpush.bf16.msra.mxu3 %v348_v4 }
  0x21   :  { %177 = vmatpush.bf16.msra.mxu0 %v347_v5  ;;  %415 = vmatpush.bf16.msra.mxu1 %v347_v5 }
  0x22   :  { %416 = vmatpush.bf16.msra.mxu2 %v347_v5  ;;  %417 = vmatpush.bf16.msra.mxu3 %v347_v5 }
  0x25   :  { %178 = vmatpush.bf16.msra.mxu0 %v346_v6  ;;  %418 = vmatpush.bf16.msra.mxu1 %v346_v6 }
  0x26   :  { %419 = vmatpush.bf16.msra.mxu2 %v346_v6  ;;  %420 = vmatpush.bf16.msra.mxu3 %v346_v6 }
  0x29   :  { %179 = vmatpush.bf16.msra.mxu0 %v345_v7  ;;  %421 = vmatpush.bf16.msra.mxu1 %v345_v7 }
  0x2a   :  { %422 = vmatpush.bf16.msra.mxu2 %v345_v7  ;;  %423 = vmatpush.bf16.msra.mxu3 %v345_v7 }
  0x2c   :  { %180 = vmatmul.bf16.vlgmr.msra.gmra.mxu0 %v337_v8  ;;  %190 = vmatmul.bf16.vlgmr.msra.gmra.mxu1 %v339_v9 }
  0x2d   :  { %200 = vmatmul.bf16.vlgmr.msra.gmra.mxu2 %v341_v10  ;;  %210 = vmatmul.bf16.vlgmr.msra.gmra.mxu3 %v343_v11 }
  0x3c   :  { %185 = vmatmul.bf16.gmra.mxu0 %v338_v12  ;;  %195 = vmatmul.bf16.gmra.mxu1 %v340_v13 }
  0x3d   :  { %205 = vmatmul.bf16.gmra.mxu2 %v342_v14  ;;  %215 = vmatmul.bf16.gmra.mxu3 %v344_v15 }
  0xa9   :  { %v181_v16 = vpop.f32.mrf.mxu0  ;;  %v191_v17 = vpop.f32.mrf.mxu1 }
  0xb0   :  { %v201_v18 = vpop.f32.mrf.mxu2  ;;  %v211_v19 = vpop.f32.mrf.mxu3 }
  0xb1   :  { %v183_v20 = vpop.f32.mrf.mxu0  ;;  %v193_v21 = vpop.f32.mrf.mxu1 }
  0xb2   :  { %v356_v22 = vpack.c.bf16 %v183_v20, %v181_v16  ;;  %v366_v23 = vpack.c.bf16 %v193_v21, %v191_v17 }
  0xb4   :  { %357 = vst [vmem:[#allocation7] sm:$0xff] %v356_v22  }
  0xb5   :  { %394 = vst [vmem:[#allocation7 + $0x10] sm:$0xff] %v366_v23  }
  0xb8   :  { %v203_v24 = vpop.f32.mrf.mxu2  ;;  %v213_v25 = vpop.f32.mrf.mxu3 }
  0xb9   :  { %v376_v26 = vpack.c.bf16 %v203_v24, %v201_v18  ;;  %v386_v27 = vpack.c.bf16 %v213_v25, %v211_v19  ;;  %v186_v28 = vpop.f32.mrf.mxu0  ;;  %v196_v29 = vpop.f32.mrf.mxu1 }
  0xbb   :  { %396 = vst [vmem:[#allocation7 + $0x20] sm:$0xff] %v376_v26  }
  0xbc   :  { %398 = vst [vmem:[#allocation7 + $0x30] sm:$0xff] %v386_v27  }
  0xc0   :  { %v206_v30 = vpop.f32.mrf.mxu2  ;;  %v216_v31 = vpop.f32.mrf.mxu3 }
  0xc1   :  { %v188_v32 = vpop.f32.mrf.mxu0  ;;  %v198_v33 = vpop.f32.mrf.mxu1 }
  0xc2   :  { %v361_v34 = vpack.c.bf16 %v188_v32, %v186_v28  ;;  %v371_v35 = vpack.c.bf16 %v198_v33, %v196_v29 }
  0xc4   :  { %393 = vst [vmem:[#allocation7 + $0x8] sm:$0xff] %v361_v34  }
  0xc5   :  { %395 = vst [vmem:[#allocation7 + $0x18] sm:$0xff] %v371_v35  }
  0xc8   :  { %v208_v36 = vpop.f32.mrf.mxu2  ;;  %v218_v37 = vpop.f32.mrf.mxu3 }
  0xc9   :  { %v381_v38 = vpack.c.bf16 %v208_v36, %v206_v30  ;;  %v391_v39 = vpack.c.bf16 %v218_v37, %v216_v31 }
  0xcb   :  { %397 = vst [vmem:[#allocation7 + $0x28] sm:$0xff] %v381_v38  }
  0xcc   :  { %399 = vst [vmem:[#allocation7 + $0x38] sm:$0xff] %v391_v39  }
  0xcd   :  { %265 = dma.vmem_to_hbm [thread:$0]  %s258_s1, 1024, %s260_s23, [#allocation4], %s508_s17, %s508_s17, %s509_s18  }
  0xce   :  { %505 = dma.done.wait [#allocation4], 1024  }
  0xcf   :  { %506 = vsyncadd [#allocation4], 4294966272 }
  0xd0   :  { %270 = vsyncpa [#allocation3], 1 }
  0xd1   :  { %271 = vsyncpa [#allocation6], 1 }
  0xd2   :  { %272 = vsyncpa [#allocation4], 1 }

</bundles_post_ra>
